<compile_context>
chip_gen: v5e
topology: v5e:2x2
jax: 0.10.0
libtpu: 0.0.40
codegen_flags: <defaults>
</compile_context>

<pallas_src>
import functools
import math

import jax
import jax.numpy as jnp
from jax.experimental import pallas as pl
from jax.experimental.pallas import tpu as pltpu


_OUT_LANES = 128   # lane-dense output slab width
_D_PAD = 16        # contraction dim padded 13 -> 16 for aligned loads


def _lstm_kernel(x_ref, w_ref, out_ref, *, T, H, D):
    """Full LSTM recurrence + sigmoid(Linear(h_n)) in one invocation.

    x_ref  : (T*Bp, D)   time-major input, batch padded to Bp, (T, Bp) flattened,
                         contraction dim zero-padded to D (=16)
    w_ref  : (56, 4H)    packed constants:
                           rows [0, H)        W_hh^T            (H, 4H)
                           rows [H, H+D)      W_ih^T (padded)   (D, 4H)
                           row  H+D           b_ih + b_hh       (1, 4H)
                           row  H+D+1, :H     final linear W    (1, H)
                           row  H+D+2, :1     final linear b    (1, 1)
    out_ref: (Bp, 128)   sigmoid(logit) broadcast across lanes (lane-dense store)
    """
    Bp = out_ref.shape[0]
    G = 4 * H

    # Static, sublane-group-aligned slices of the packed weight slab (no extra DMAs).
    whh = w_ref[0:H, :]                          # (H, 4H)  constant RHS of recurrence
    wih = w_ref[H:H + D, :]                      # (D, 4H)
    bias = w_ref[H + D:H + D + 1, :]             # (1, 4H)
    wlin = w_ref[H + D + 1:H + D + 2, 0:H]       # (1, H)
    blin = w_ref[H + D + 2:H + D + 3, 0:1]       # (1, 1)

    # --- Input projection for ALL time steps in one MXU pass (off the serial path).
    gx = jnp.dot(x_ref[...], wih, preferred_element_type=jnp.float32) + bias  # (T*Bp, 4H)

    # Static lane mask selecting the "g" gate block (PyTorch gate order i, f, g, o).
    lane = jax.lax.broadcasted_iota(jnp.int32, (Bp, G), 1)
    use_tanh = (lane >= 2 * H) & (lane < 3 * H)

    h = jnp.zeros((Bp, H), jnp.float32)
    c = jnp.zeros((Bp, H), jnp.float32)

    # Fully unrolled recurrence: T is small & static, so gx (T vregs) + whh + state
    # stay comfortably inside the 64-vreg budget and the LLO scheduler sees the whole
    # serial chain.  (If T grows past ~32, switch to lax.fori_loop with gx staged in
    # VMEM scratch to avoid spills.)
    for t in range(T):
        gates = gx[t * Bp:(t + 1) * Bp, :] + jnp.dot(
            h, whh, preferred_element_type=jnp.float32)          # (Bp, 4H)
        # Single-transcendental activation: tanh(x) = 2*sigmoid(2x) - 1.
        pre = jnp.where(use_tanh, gates + gates, gates)
        s = jax.nn.sigmoid(pre)
        act = jnp.where(use_tanh, s + s - 1.0, s)
        i_g = act[:, 0 * H:1 * H]
        f_g = act[:, 1 * H:2 * H]
        g_g = act[:, 2 * H:3 * H]
        o_g = act[:, 3 * H:4 * H]
        c = f_g * c + i_g * g_g
        h = o_g * jnp.tanh(c)

    # --- Final Linear(H -> 1) + Sigmoid as a VPU multiply + lane reduce (no N=1 MXU op).
    logits = jnp.sum(h * wlin, axis=-1, keepdims=True) + blin     # (Bp, 1)
    out_ref[...] = jnp.broadcast_to(jax.nn.sigmoid(logits), out_ref.shape)


def _build_weight_slab(w_ih, w_hh, b_ih, b_hh, w_lin, b_lin, H, d_pad):
    """Pack all constant operands into one (8k, 4H) f32 slab -> single DMA."""
    G = 4 * H
    whh_t = jnp.transpose(w_hh).astype(jnp.float32)                       # (H, 4H)
    wih_t = jnp.transpose(w_ih).astype(jnp.float32)                       # (D, 4H)
    wih_t = jnp.pad(wih_t, ((0, d_pad - wih_t.shape[0]), (0, 0)))         # (d_pad, 4H)
    bias = (b_ih + b_hh).reshape(1, G).astype(jnp.float32)                # (1, 4H)
    wlin_row = jnp.pad(w_lin.reshape(1, H).astype(jnp.float32),
                       ((0, 0), (0, G - H)))                              # (1, 4H)
    blin_row = jnp.pad(b_lin.reshape(1, 1).astype(jnp.float32),
                       ((0, 0), (0, G - 1)))                              # (1, 4H)
    slab = jnp.concatenate([whh_t, wih_t, bias, wlin_row, blin_row], axis=0)
    rows = slab.shape[0]
    rows_pad = ((rows + 7) // 8) * 8
    return jnp.pad(slab, ((0, rows_pad - rows), (0, 0)))


def _lstm_forward_impl(x_btd, w_ih, w_hh, b_ih, b_hh, w_lin, b_lin):
    """x_btd: (B, T, D) batch_first input (like PyTorch). Returns (1, B, 1)."""
    B, T, D = x_btd.shape
    H = w_hh.shape[1]
    Bp = ((B + 7) // 8) * 8                                    # pad batch to a sublane group

    # Layout plumbing (fused by jit, outside the serial path): time-major,
    # batch-padded, contraction-dim-padded, flattened.
    x_tbd = jnp.transpose(x_btd, (1, 0, 2)).astype(jnp.float32)            # (T, B, D)
    x_pad = jnp.pad(x_tbd, ((0, 0), (0, Bp - B), (0, _D_PAD - D)))         # (T, Bp, Dp)
    x2d = x_pad.reshape(T * Bp, _D_PAD)                                    # (T*Bp, Dp)

    slab = _build_weight_slab(w_ih, w_hh, b_ih, b_hh, w_lin, b_lin, H, _D_PAD)

    kernel = functools.partial(_lstm_kernel, T=T, H=H, D=_D_PAD)
    out = pl.pallas_call(
        kernel,
        out_shape=jax.ShapeDtypeStruct((Bp, _OUT_LANES), jnp.float32),
        in_specs=[pl.BlockSpec(memory_space=pltpu.MemorySpace.VMEM),
                  pl.BlockSpec(memory_space=pltpu.MemorySpace.VMEM)],
        out_specs=pl.BlockSpec(memory_space=pltpu.MemorySpace.VMEM),
    )(x2d, slab)

    # PyTorch: sigmoid(linear(h_n)) where h_n has shape (1, B, H) -> output (1, B, 1).
    return out[:B, :1].reshape(1, B, 1)


# Everything (layout plumbing + pallas_call + final slice) under one jit.
lstm_forward = jax.jit(_lstm_forward_impl)


def _reference_forward(x_btd, w_ih, w_hh, b_ih, b_hh, w_lin, b_lin):
    """Plain-JAX reference matching torch.nn.LSTM semantics (gate order i, f, g, o)."""
    B, T, D = x_btd.shape
    H = w_hh.shape[1]
    h = jnp.zeros((B, H), jnp.float32)
    c = jnp.zeros((B, H), jnp.float32)

    def step(carry, x_t):
        h, c = carry
        gates = x_t @ w_ih.T + h @ w_hh.T + b_ih + b_hh
        i = jax.nn.sigmoid(gates[:, 0 * H:1 * H])
        f = jax.nn.sigmoid(gates[:, 1 * H:2 * H])
        g = jnp.tanh(gates[:, 2 * H:3 * H])
        o = jax.nn.sigmoid(gates[:, 3 * H:4 * H])
        c = f * c + i * g
        h = o * jnp.tanh(c)
        return (h, c), None

    (h, c), _ = jax.lax.scan(step, (h, c), jnp.transpose(x_btd, (1, 0, 2)))
    return jax.nn.sigmoid(h @ w_lin.T + b_lin).reshape(1, B, 1)


if __name__ == "__main__":
    input_dim = 13     # len(idx) in the original module
    hidden_dim = 32
    output_dim = 1
    B, T = 2, 8

    key = jax.random.PRNGKey(0)
    ks = jax.random.split(key, 8)
    bound = 1.0 / math.sqrt(hidden_dim)   # PyTorch default uniform init bound

    w_ih = jax.random.uniform(ks[0], (4 * hidden_dim, input_dim), jnp.float32, -bound, bound)
    w_hh = jax.random.uniform(ks[1], (4 * hidden_dim, hidden_dim), jnp.float32, -bound, bound)
    b_ih = jax.random.uniform(ks[2], (4 * hidden_dim,), jnp.float32, -bound, bound)
    b_hh = jax.random.uniform(ks[3], (4 * hidden_dim,), jnp.float32, -bound, bound)
    w_lin = jax.random.uniform(ks[4], (output_dim, hidden_dim), jnp.float32, -bound, bound)
    b_lin = jax.random.uniform(ks[5], (output_dim,), jnp.float32, -bound, bound)

    x = jax.random.normal(ks[6], (B, T, input_dim), jnp.float32)

    out = lstm_forward(x, w_ih, w_hh, b_ih, b_hh, w_lin, b_lin)
    out = jax.block_until_ready(out)

    ref = _reference_forward(x, w_ih, w_hh, b_ih, b_hh, w_lin, b_lin)
    assert out.shape == (1, B, 1), out.shape
    assert jnp.allclose(out, ref, atol=1e-5, rtol=1e-5), (out, ref)

    print("KERNEL_OK")
</pallas_src>

<mosaic_0001>
module attributes {stable_mosaic.version = 11 : i64} {
  func.func @_lstm_kernel(%arg0: memref<64x16xf32, #tpu.memory_space<vmem>>, %arg1: memref<56x128xf32, #tpu.memory_space<vmem>>, %arg2: memref<8x128xf32, #tpu.memory_space<vmem>>) attributes {dimension_semantics = [], scalar_prefetch = 0 : i64, scratch_operands = 0 : i64, tpu.core_type = #tpu.core_type<tc>} {
    %c0 = arith.constant 0 : index
    %c0_0 = arith.constant 0 : index
    %0 = vector.load %arg1[%c0, %c0_0] : memref<56x128xf32, #tpu.memory_space<vmem>>, vector<32x128xf32>
    %c32 = arith.constant 32 : index
    %c0_1 = arith.constant 0 : index
    %1 = vector.load %arg1[%c32, %c0_1] : memref<56x128xf32, #tpu.memory_space<vmem>>, vector<16x128xf32>
    %c48 = arith.constant 48 : index
    %c0_2 = arith.constant 0 : index
    %2 = vector.load %arg1[%c48, %c0_2] : memref<56x128xf32, #tpu.memory_space<vmem>>, vector<1x128xf32>
    %c49 = arith.constant 49 : index
    %c0_3 = arith.constant 0 : index
    %3 = vector.load %arg1[%c49, %c0_3] : memref<56x128xf32, #tpu.memory_space<vmem>>, vector<1x32xf32>
    %c50 = arith.constant 50 : index
    %c0_4 = arith.constant 0 : index
    %4 = vector.load %arg1[%c50, %c0_4] : memref<56x128xf32, #tpu.memory_space<vmem>>, vector<1x1xf32>
    %c0_5 = arith.constant 0 : index
    %c0_6 = arith.constant 0 : index
    %5 = vector.load %arg0[%c0_5, %c0_6] : memref<64x16xf32, #tpu.memory_space<vmem>>, vector<64x16xf32>
    %cst = arith.constant dense<0.000000e+00> : vector<64x128xf32>
    %6 = tpu.matmul %5, %1, %cst {dimension_numbers = #tpu.dot_dimension_numbers<[1], [0], [0], [1], [0, 0, 1, 1], [], []>} : vector<64x16xf32>, vector<16x128xf32>, vector<64x128xf32> -> vector<64x128xf32>
    %7 = vector.broadcast %2 : vector<1x128xf32> to vector<64x128xf32>
    %8 = arith.addf %6, %7 : vector<64x128xf32>
    %9 = tpu.iota {dimensions = array<i32: 1>} : vector<8x128xi32>
    %c64_i32 = arith.constant 64 : i32
    %10 = vector.broadcast %c64_i32 : i32 to vector<8x128xi32>
    %11 = arith.cmpi sge, %9, %10 : vector<8x128xi32>
    %c96_i32 = arith.constant 96 : i32
    %12 = vector.broadcast %c96_i32 : i32 to vector<8x128xi32>
    %13 = arith.cmpi slt, %9, %12 : vector<8x128xi32>
    %14 = arith.andi %11, %13 : vector<8x128xi1>
    %cst_7 = arith.constant 0.000000e+00 : f32
    %15 = vector.broadcast %cst_7 : f32 to vector<8x32xf32>
    %cst_8 = arith.constant 0.000000e+00 : f32
    %16 = vector.broadcast %cst_8 : f32 to vector<8x32xf32>
    %17 = vector.extract_strided_slice %8 {offsets = [0, 0], sizes = [8, 128], strides = [1, 1]} : vector<64x128xf32> to vector<8x128xf32>
    %cst_9 = arith.constant dense<0.000000e+00> : vector<8x128xf32>
    %18 = tpu.matmul %15, %0, %cst_9 {dimension_numbers = #tpu.dot_dimension_numbers<[1], [0], [0], [1], [0, 0, 1, 1], [], []>} : vector<8x32xf32>, vector<32x128xf32>, vector<8x128xf32> -> vector<8x128xf32>
    %19 = arith.addf %17, %18 : vector<8x128xf32>
    %20 = arith.addf %19, %19 : vector<8x128xf32>
    %21 = arith.select %14, %20, %19 : vector<8x128xi1>, vector<8x128xf32>
    %22 = arith.negf %21 : vector<8x128xf32>
    %23 = math.exp %22 : vector<8x128xf32>
    %cst_10 = arith.constant 1.000000e+00 : f32
    %24 = vector.broadcast %cst_10 : f32 to vector<8x128xf32>
    %25 = arith.addf %24, %23 : vector<8x128xf32>
    %26 = arith.divf %24, %25 : vector<8x128xf32>
    %27 = arith.addf %26, %26 : vector<8x128xf32>
    %cst_11 = arith.constant 1.000000e+00 : f32
    %28 = vector.broadcast %cst_11 : f32 to vector<8x128xf32>
    %29 = arith.subf %27, %28 : vector<8x128xf32>
    %30 = arith.select %14, %29, %26 : vector<8x128xi1>, vector<8x128xf32>
    %31 = vector.extract_strided_slice %30 {offsets = [0, 0], sizes = [8, 32], strides = [1, 1]} : vector<8x128xf32> to vector<8x32xf32>
    %32 = vector.extract_strided_slice %30 {offsets = [0, 32], sizes = [8, 32], strides = [1, 1]} : vector<8x128xf32> to vector<8x32xf32>
    %33 = vector.extract_strided_slice %30 {offsets = [0, 64], sizes = [8, 32], strides = [1, 1]} : vector<8x128xf32> to vector<8x32xf32>
    %34 = vector.extract_strided_slice %30 {offsets = [0, 96], sizes = [8, 32], strides = [1, 1]} : vector<8x128xf32> to vector<8x32xf32>
    %35 = arith.mulf %32, %16 : vector<8x32xf32>
    %36 = arith.mulf %31, %33 : vector<8x32xf32>
    %37 = arith.addf %35, %36 : vector<8x32xf32>
    %38 = math.tanh %37 : vector<8x32xf32>
    %39 = arith.mulf %34, %38 : vector<8x32xf32>
    %40 = vector.extract_strided_slice %8 {offsets = [8, 0], sizes = [8, 128], strides = [1, 1]} : vector<64x128xf32> to vector<8x128xf32>
    %cst_12 = arith.constant dense<0.000000e+00> : vector<8x128xf32>
    %41 = tpu.matmul %39, %0, %cst_12 {dimension_numbers = #tpu.dot_dimension_numbers<[1], [0], [0], [1], [0, 0, 1, 1], [], []>} : vector<8x32xf32>, vector<32x128xf32>, vector<8x128xf32> -> vector<8x128xf32>
    %42 = arith.addf %40, %41 : vector<8x128xf32>
    %43 = arith.addf %42, %42 : vector<8x128xf32>
    %44 = arith.select %14, %43, %42 : vector<8x128xi1>, vector<8x128xf32>
    %45 = arith.negf %44 : vector<8x128xf32>
    %46 = math.exp %45 : vector<8x128xf32>
    %cst_13 = arith.constant 1.000000e+00 : f32
    %47 = vector.broadcast %cst_13 : f32 to vector<8x128xf32>
    %48 = arith.addf %47, %46 : vector<8x128xf32>
    %49 = arith.divf %47, %48 : vector<8x128xf32>
    %50 = arith.addf %49, %49 : vector<8x128xf32>
    %cst_14 = arith.constant 1.000000e+00 : f32
    %51 = vector.broadcast %cst_14 : f32 to vector<8x128xf32>
    %52 = arith.subf %50, %51 : vector<8x128xf32>
    %53 = arith.select %14, %52, %49 : vector<8x128xi1>, vector<8x128xf32>
    %54 = vector.extract_strided_slice %53 {offsets = [0, 0], sizes = [8, 32], strides = [1, 1]} : vector<8x128xf32> to vector<8x32xf32>
    %55 = vector.extract_strided_slice %53 {offsets = [0, 32], sizes = [8, 32], strides = [1, 1]} : vector<8x128xf32> to vector<8x32xf32>
    %56 = vector.extract_strided_slice %53 {offsets = [0, 64], sizes = [8, 32], strides = [1, 1]} : vector<8x128xf32> to vector<8x32xf32>
    %57 = vector.extract_strided_slice %53 {offsets = [0, 96], sizes = [8, 32], strides = [1, 1]} : vector<8x128xf32> to vector<8x32xf32>
    %58 = arith.mulf %55, %37 : vector<8x32xf32>
    %59 = arith.mulf %54, %56 : vector<8x32xf32>
    %60 = arith.addf %58, %59 : vector<8x32xf32>
    %61 = math.tanh %60 : vector<8x32xf32>
    %62 = arith.mulf %57, %61 : vector<8x32xf32>
    %63 = vector.extract_strided_slice %8 {offsets = [16, 0], sizes = [8, 128], strides = [1, 1]} : vector<64x128xf32> to vector<8x128xf32>
    %cst_15 = arith.constant dense<0.000000e+00> : vector<8x128xf32>
    %64 = tpu.matmul %62, %0, %cst_15 {dimension_numbers = #tpu.dot_dimension_numbers<[1], [0], [0], [1], [0, 0, 1, 1], [], []>} : vector<8x32xf32>, vector<32x128xf32>, vector<8x128xf32> -> vector<8x128xf32>
    %65 = arith.addf %63, %64 : vector<8x128xf32>
    %66 = arith.addf %65, %65 : vector<8x128xf32>
    %67 = arith.select %14, %66, %65 : vector<8x128xi1>, vector<8x128xf32>
    %68 = arith.negf %67 : vector<8x128xf32>
    %69 = math.exp %68 : vector<8x128xf32>
    %cst_16 = arith.constant 1.000000e+00 : f32
    %70 = vector.broadcast %cst_16 : f32 to vector<8x128xf32>
    %71 = arith.addf %70, %69 : vector<8x128xf32>
    %72 = arith.divf %70, %71 : vector<8x128xf32>
    %73 = arith.addf %72, %72 : vector<8x128xf32>
    %cst_17 = arith.constant 1.000000e+00 : f32
    %74 = vector.broadcast %cst_17 : f32 to vector<8x128xf32>
    %75 = arith.subf %73, %74 : vector<8x128xf32>
    %76 = arith.select %14, %75, %72 : vector<8x128xi1>, vector<8x128xf32>
    %77 = vector.extract_strided_slice %76 {offsets = [0, 0], sizes = [8, 32], strides = [1, 1]} : vector<8x128xf32> to vector<8x32xf32>
    %78 = vector.extract_strided_slice %76 {offsets = [0, 32], sizes = [8, 32], strides = [1, 1]} : vector<8x128xf32> to vector<8x32xf32>
    %79 = vector.extract_strided_slice %76 {offsets = [0, 64], sizes = [8, 32], strides = [1, 1]} : vector<8x128xf32> to vector<8x32xf32>
    %80 = vector.extract_strided_slice %76 {offsets = [0, 96], sizes = [8, 32], strides = [1, 1]} : vector<8x128xf32> to vector<8x32xf32>
    %81 = arith.mulf %78, %60 : vector<8x32xf32>
    %82 = arith.mulf %77, %79 : vector<8x32xf32>
    %83 = arith.addf %81, %82 : vector<8x32xf32>
    %84 = math.tanh %83 : vector<8x32xf32>
    %85 = arith.mulf %80, %84 : vector<8x32xf32>
    %86 = vector.extract_strided_slice %8 {offsets = [24, 0], sizes = [8, 128], strides = [1, 1]} : vector<64x128xf32> to vector<8x128xf32>
    %cst_18 = arith.constant dense<0.000000e+00> : vector<8x128xf32>
    %87 = tpu.matmul %85, %0, %cst_18 {dimension_numbers = #tpu.dot_dimension_numbers<[1], [0], [0], [1], [0, 0, 1, 1], [], []>} : vector<8x32xf32>, vector<32x128xf32>, vector<8x128xf32> -> vector<8x128xf32>
    %88 = arith.addf %86, %87 : vector<8x128xf32>
    %89 = arith.addf %88, %88 : vector<8x128xf32>
    %90 = arith.select %14, %89, %88 : vector<8x128xi1>, vector<8x128xf32>
    %91 = arith.negf %90 : vector<8x128xf32>
    %92 = math.exp %91 : vector<8x128xf32>
    %cst_19 = arith.constant 1.000000e+00 : f32
    %93 = vector.broadcast %cst_19 : f32 to vector<8x128xf32>
    %94 = arith.addf %93, %92 : vector<8x128xf32>
    %95 = arith.divf %93, %94 : vector<8x128xf32>
    %96 = arith.addf %95, %95 : vector<8x128xf32>
    %cst_20 = arith.constant 1.000000e+00 : f32
    %97 = vector.broadcast %cst_20 : f32 to vector<8x128xf32>
    %98 = arith.subf %96, %97 : vector<8x128xf32>
    %99 = arith.select %14, %98, %95 : vector<8x128xi1>, vector<8x128xf32>
    %100 = vector.extract_strided_slice %99 {offsets = [0, 0], sizes = [8, 32], strides = [1, 1]} : vector<8x128xf32> to vector<8x32xf32>
    %101 = vector.extract_strided_slice %99 {offsets = [0, 32], sizes = [8, 32], strides = [1, 1]} : vector<8x128xf32> to vector<8x32xf32>
    %102 = vector.extract_strided_slice %99 {offsets = [0, 64], sizes = [8, 32], strides = [1, 1]} : vector<8x128xf32> to vector<8x32xf32>
    %103 = vector.extract_strided_slice %99 {offsets = [0, 96], sizes = [8, 32], strides = [1, 1]} : vector<8x128xf32> to vector<8x32xf32>
    %104 = arith.mulf %101, %83 : vector<8x32xf32>
    %105 = arith.mulf %100, %102 : vector<8x32xf32>
    %106 = arith.addf %104, %105 : vector<8x32xf32>
    %107 = math.tanh %106 : vector<8x32xf32>
    %108 = arith.mulf %103, %107 : vector<8x32xf32>
    %109 = vector.extract_strided_slice %8 {offsets = [32, 0], sizes = [8, 128], strides = [1, 1]} : vector<64x128xf32> to vector<8x128xf32>
    %cst_21 = arith.constant dense<0.000000e+00> : vector<8x128xf32>
    %110 = tpu.matmul %108, %0, %cst_21 {dimension_numbers = #tpu.dot_dimension_numbers<[1], [0], [0], [1], [0, 0, 1, 1], [], []>} : vector<8x32xf32>, vector<32x128xf32>, vector<8x128xf32> -> vector<8x128xf32>
    %111 = arith.addf %109, %110 : vector<8x128xf32>
    %112 = arith.addf %111, %111 : vector<8x128xf32>
    %113 = arith.select %14, %112, %111 : vector<8x128xi1>, vector<8x128xf32>
    %114 = arith.negf %113 : vector<8x128xf32>
    %115 = math.exp %114 : vector<8x128xf32>
    %cst_22 = arith.constant 1.000000e+00 : f32
    %116 = vector.broadcast %cst_22 : f32 to vector<8x128xf32>
    %117 = arith.addf %116, %115 : vector<8x128xf32>
    %118 = arith.divf %116, %117 : vector<8x128xf32>
    %119 = arith.addf %118, %118 : vector<8x128xf32>
    %cst_23 = arith.constant 1.000000e+00 : f32
    %120 = vector.broadcast %cst_23 : f32 to vector<8x128xf32>
    %121 = arith.subf %119, %120 : vector<8x128xf32>
    %122 = arith.select %14, %121, %118 : vector<8x128xi1>, vector<8x128xf32>
    %123 = vector.extract_strided_slice %122 {offsets = [0, 0], sizes = [8, 32], strides = [1, 1]} : vector<8x128xf32> to vector<8x32xf32>
    %124 = vector.extract_strided_slice %122 {offsets = [0, 32], sizes = [8, 32], strides = [1, 1]} : vector<8x128xf32> to vector<8x32xf32>
    %125 = vector.extract_strided_slice %122 {offsets = [0, 64], sizes = [8, 32], strides = [1, 1]} : vector<8x128xf32> to vector<8x32xf32>
    %126 = vector.extract_strided_slice %122 {offsets = [0, 96], sizes = [8, 32], strides = [1, 1]} : vector<8x128xf32> to vector<8x32xf32>
    %127 = arith.mulf %124, %106 : vector<8x32xf32>
    %128 = arith.mulf %123, %125 : vector<8x32xf32>
    %129 = arith.addf %127, %128 : vector<8x32xf32>
    %130 = math.tanh %129 : vector<8x32xf32>
    %131 = arith.mulf %126, %130 : vector<8x32xf32>
    %132 = vector.extract_strided_slice %8 {offsets = [40, 0], sizes = [8, 128], strides = [1, 1]} : vector<64x128xf32> to vector<8x128xf32>
    %cst_24 = arith.constant dense<0.000000e+00> : vector<8x128xf32>
    %133 = tpu.matmul %131, %0, %cst_24 {dimension_numbers = #tpu.dot_dimension_numbers<[1], [0], [0], [1], [0, 0, 1, 1], [], []>} : vector<8x32xf32>, vector<32x128xf32>, vector<8x128xf32> -> vector<8x128xf32>
    %134 = arith.addf %132, %133 : vector<8x128xf32>
    %135 = arith.addf %134, %134 : vector<8x128xf32>
    %136 = arith.select %14, %135, %134 : vector<8x128xi1>, vector<8x128xf32>
    %137 = arith.negf %136 : vector<8x128xf32>
    %138 = math.exp %137 : vector<8x128xf32>
    %cst_25 = arith.constant 1.000000e+00 : f32
    %139 = vector.broadcast %cst_25 : f32 to vector<8x128xf32>
    %140 = arith.addf %139, %138 : vector<8x128xf32>
    %141 = arith.divf %139, %140 : vector<8x128xf32>
    %142 = arith.addf %141, %141 : vector<8x128xf32>
    %cst_26 = arith.constant 1.000000e+00 : f32
    %143 = vector.broadcast %cst_26 : f32 to vector<8x128xf32>
    %144 = arith.subf %142, %143 : vector<8x128xf32>
    %145 = arith.select %14, %144, %141 : vector<8x128xi1>, vector<8x128xf32>
    %146 = vector.extract_strided_slice %145 {offsets = [0, 0], sizes = [8, 32], strides = [1, 1]} : vector<8x128xf32> to vector<8x32xf32>
    %147 = vector.extract_strided_slice %145 {offsets = [0, 32], sizes = [8, 32], strides = [1, 1]} : vector<8x128xf32> to vector<8x32xf32>
    %148 = vector.extract_strided_slice %145 {offsets = [0, 64], sizes = [8, 32], strides = [1, 1]} : vector<8x128xf32> to vector<8x32xf32>
    %149 = vector.extract_strided_slice %145 {offsets = [0, 96], sizes = [8, 32], strides = [1, 1]} : vector<8x128xf32> to vector<8x32xf32>
    %150 = arith.mulf %147, %129 : vector<8x32xf32>
    %151 = arith.mulf %146, %148 : vector<8x32xf32>
    %152 = arith.addf %150, %151 : vector<8x32xf32>
    %153 = math.tanh %152 : vector<8x32xf32>
    %154 = arith.mulf %149, %153 : vector<8x32xf32>
    %155 = vector.extract_strided_slice %8 {offsets = [48, 0], sizes = [8, 128], strides = [1, 1]} : vector<64x128xf32> to vector<8x128xf32>
    %cst_27 = arith.constant dense<0.000000e+00> : vector<8x128xf32>
    %156 = tpu.matmul %154, %0, %cst_27 {dimension_numbers = #tpu.dot_dimension_numbers<[1], [0], [0], [1], [0, 0, 1, 1], [], []>} : vector<8x32xf32>, vector<32x128xf32>, vector<8x128xf32> -> vector<8x128xf32>
    %157 = arith.addf %155, %156 : vector<8x128xf32>
    %158 = arith.addf %157, %157 : vector<8x128xf32>
    %159 = arith.select %14, %158, %157 : vector<8x128xi1>, vector<8x128xf32>
    %160 = arith.negf %159 : vector<8x128xf32>
    %161 = math.exp %160 : vector<8x128xf32>
    %cst_28 = arith.constant 1.000000e+00 : f32
    %162 = vector.broadcast %cst_28 : f32 to vector<8x128xf32>
    %163 = arith.addf %162, %161 : vector<8x128xf32>
    %164 = arith.divf %162, %163 : vector<8x128xf32>
    %165 = arith.addf %164, %164 : vector<8x128xf32>
    %cst_29 = arith.constant 1.000000e+00 : f32
    %166 = vector.broadcast %cst_29 : f32 to vector<8x128xf32>
    %167 = arith.subf %165, %166 : vector<8x128xf32>
    %168 = arith.select %14, %167, %164 : vector<8x128xi1>, vector<8x128xf32>
    %169 = vector.extract_strided_slice %168 {offsets = [0, 0], sizes = [8, 32], strides = [1, 1]} : vector<8x128xf32> to vector<8x32xf32>
    %170 = vector.extract_strided_slice %168 {offsets = [0, 32], sizes = [8, 32], strides = [1, 1]} : vector<8x128xf32> to vector<8x32xf32>
    %171 = vector.extract_strided_slice %168 {offsets = [0, 64], sizes = [8, 32], strides = [1, 1]} : vector<8x128xf32> to vector<8x32xf32>
    %172 = vector.extract_strided_slice %168 {offsets = [0, 96], sizes = [8, 32], strides = [1, 1]} : vector<8x128xf32> to vector<8x32xf32>
    %173 = arith.mulf %170, %152 : vector<8x32xf32>
    %174 = arith.mulf %169, %171 : vector<8x32xf32>
    %175 = arith.addf %173, %174 : vector<8x32xf32>
    %176 = math.tanh %175 : vector<8x32xf32>
    %177 = arith.mulf %172, %176 : vector<8x32xf32>
    %178 = vector.extract_strided_slice %8 {offsets = [56, 0], sizes = [8, 128], strides = [1, 1]} : vector<64x128xf32> to vector<8x128xf32>
    %cst_30 = arith.constant dense<0.000000e+00> : vector<8x128xf32>
    %179 = tpu.matmul %177, %0, %cst_30 {dimension_numbers = #tpu.dot_dimension_numbers<[1], [0], [0], [1], [0, 0, 1, 1], [], []>} : vector<8x32xf32>, vector<32x128xf32>, vector<8x128xf32> -> vector<8x128xf32>
    %180 = arith.addf %178, %179 : vector<8x128xf32>
    %181 = arith.addf %180, %180 : vector<8x128xf32>
    %182 = arith.select %14, %181, %180 : vector<8x128xi1>, vector<8x128xf32>
    %183 = arith.negf %182 : vector<8x128xf32>
    %184 = math.exp %183 : vector<8x128xf32>
    %cst_31 = arith.constant 1.000000e+00 : f32
    %185 = vector.broadcast %cst_31 : f32 to vector<8x128xf32>
    %186 = arith.addf %185, %184 : vector<8x128xf32>
    %187 = arith.divf %185, %186 : vector<8x128xf32>
    %188 = arith.addf %187, %187 : vector<8x128xf32>
    %cst_32 = arith.constant 1.000000e+00 : f32
    %189 = vector.broadcast %cst_32 : f32 to vector<8x128xf32>
    %190 = arith.subf %188, %189 : vector<8x128xf32>
    %191 = arith.select %14, %190, %187 : vector<8x128xi1>, vector<8x128xf32>
    %192 = vector.extract_strided_slice %191 {offsets = [0, 0], sizes = [8, 32], strides = [1, 1]} : vector<8x128xf32> to vector<8x32xf32>
    %193 = vector.extract_strided_slice %191 {offsets = [0, 32], sizes = [8, 32], strides = [1, 1]} : vector<8x128xf32> to vector<8x32xf32>
    %194 = vector.extract_strided_slice %191 {offsets = [0, 64], sizes = [8, 32], strides = [1, 1]} : vector<8x128xf32> to vector<8x32xf32>
    %195 = vector.extract_strided_slice %191 {offsets = [0, 96], sizes = [8, 32], strides = [1, 1]} : vector<8x128xf32> to vector<8x32xf32>
    %196 = arith.mulf %193, %175 : vector<8x32xf32>
    %197 = arith.mulf %192, %194 : vector<8x32xf32>
    %198 = arith.addf %196, %197 : vector<8x32xf32>
    %199 = math.tanh %198 : vector<8x32xf32>
    %200 = arith.mulf %195, %199 : vector<8x32xf32>
    %201 = vector.broadcast %3 : vector<1x32xf32> to vector<8x32xf32>
    %202 = arith.mulf %200, %201 : vector<8x32xf32>
    %cst_33 = arith.constant dense<0.000000e+00> : vector<8xf32>
    %203 = vector.multi_reduction <add>, %202, %cst_33 [1] : vector<8x32xf32> to vector<8xf32>
    %204 = vector.shape_cast %203 : vector<8xf32> to vector<8x1xf32>
    %205 = vector.broadcast %4 : vector<1x1xf32> to vector<8x1xf32>
    %206 = arith.addf %204, %205 : vector<8x1xf32>
    %207 = arith.negf %206 : vector<8x1xf32>
    %208 = math.exp %207 : vector<8x1xf32>
    %cst_34 = arith.constant 1.000000e+00 : f32
    %209 = vector.broadcast %cst_34 : f32 to vector<8x1xf32>
    %210 = arith.addf %209, %208 : vector<8x1xf32>
    %211 = arith.divf %209, %210 : vector<8x1xf32>
    %212 = vector.shape_cast %211 : vector<8x1xf32> to vector<8x1xf32>
    %213 = vector.broadcast %212 : vector<8x1xf32> to vector<8x128xf32>
    %c0_35 = arith.constant 0 : index
    %c0_36 = arith.constant 0 : index
    %214 = vector.load %arg2[%c0_35, %c0_36] : memref<8x128xf32, #tpu.memory_space<vmem>>, vector<8x128xf32>
    tpu.vector_store %arg2[%c0_35, %c0_36], %213 {strides = array<i32>} : memref<8x128xf32, #tpu.memory_space<vmem>>, vector<8x128xf32>,
    return
  }
}

</mosaic_0001>

<bundles_post_ra>
// kernel: _lstm_forward_impl.1
= control target key start
LH: loop header
LB: loop body
LE: loop exit
PB: predicated region body
PF: predicated region fallthrough
CT: control target
= control target key end

     0   :  { %vm29_vm0 = vcmask 130048   ;;  %v775_v7 = vmov 0.0   ;;  %v95_v8 = vlaneseq  ;;  %s776_s25 = smov 64   ;;  %s777_s26 = smov 32   ;;  %vm100_vm8 = vcmask 261120   ;;  %s992_s1 = inlined_call_operand.vmem [shape: f32[56,128], index: 1, kind: input, shape index: {}]   ;;  %s993_s0 = inlined_call_operand.vmem [shape: f32[64,16], index: 0, kind: input, shape index: {}]   ;;  %s994_s2 = inlined_call_operand.vmem [shape: f32[8,128], index: 2, kind: output, shape index: {}]  }
   0x1   :  { %v798_v0 = vld [vmem:[%s992_s1 + $0x18] sm:$0xff]  ;;  %v16_v1 = vld [vmem:[%s992_s1 + $0x28] sm:$0xff]  ;;  %v806_v2 = vld [vmem:[%s992_s1 + $0x10] sm:$0xff]  ;;  %s778_s14 = smov 96  }
   0x2   :  { %116 = vmatpush.msra.mxu1 %v798_v0  ;;  %68 = vmatpush.msra.mxu0 %v16_v1  ;;  %v15_v3 = vld [vmem:[%s992_s1 + $0x20] sm:$0xff]  ;;  %v818_v5 = vld [vmem:[%s992_s1 + $0x8] sm:$0xff]  ;;  %v852_v9 = vld [vmem:[%s992_s1 + $0x30] ss:$0 sm:$0xff]  ;;  %v96_v10 = vand.u32 127, %v95_v8 }
   0x3   :  { %v20_v4 = vld [vmem:[%s993_s0] sm:$0xff]  ;;  %183 = vmatpush.msra.mxu2 %v798_v0  ;;  %711 = vmatpush.msra.mxu3 %v16_v1  ;;  %v21_v42 = vld [vmem:[%s993_s0 + $0x8] sm:$0xff] }
   0x4   :  { %117 = vmatpush.msra.mxu1 %v806_v2  ;;  %69 = vmatpush.msra.mxu0 %v15_v3  ;;  %v826_v6 = vld [vmem:[%s992_s1] sm:$0xff]  ;;  %vm97_vm1 = vcmp.ge.s32.totalorder %v96_v10, 64  ;;  %vm98_vm2 = vcmp.lt.s32.totalorder %v96_v10, 96 }
   0x5   :  { %679 = vmatmul.msk.f32.vlgmr.msra.gmra.mxu0 %vm29_vm0, %v20_v4  ;;  %184 = vmatpush.msra.mxu2 %v806_v2  ;;  %vm855_vm3 = vmand %vm97_vm1, %vm98_vm2 }
   0x6   :  { %118 = vmatpush.msra.mxu1 %v818_v5  ;;  %712 = vmatpush.msra.mxu3 %v15_v3 }
   0x7   :  { %185 = vmatpush.msra.mxu2 %v818_v5 }
   0x8   :  { %250 = vmatpush.msrb.mxu3 %v798_v0  ;;  %119 = vmatpush.msra.mxu1 %v826_v6 }
   0x9   :  { %120 = vmatmul.f32.vlgmr.msra.gmra.mxu1 %v775_v7  ;;  %186 = vmatpush.msra.mxu2 %v826_v6 }
   0xa   :  { %251 = vmatpush.msrb.mxu3 %v806_v2  ;;  %317 = vmatpush.msrb.mxu1 %v798_v0 }
   0xb   :  { %384 = vmatpush.msrb.mxu2 %v798_v0 }
   0xc   :  { %252 = vmatpush.msrb.mxu3 %v818_v5  ;;  %318 = vmatpush.msrb.mxu1 %v806_v2 }
   0xd   :  { %385 = vmatpush.msrb.mxu2 %v806_v2  ;;  %680 = vmatmul.msk.f32.gmra.mxu0 %vm29_vm0, %v21_v42 }
   0xe   :  { %253 = vmatpush.msrb.mxu3 %v826_v6  ;;  %319 = vmatpush.msrb.mxu1 %v818_v5 }
   0xf   :  { %386 = vmatpush.msrb.mxu2 %v818_v5 }
  0x10   :  { %320 = vmatpush.msrb.mxu1 %v826_v6 }
  0x11   :  { %387 = vmatpush.msrb.mxu2 %v826_v6 }
  0x12   :  { %518 = vmatpush.msra.mxu1 %v798_v0 }
  0x14   :  { %519 = vmatpush.msra.mxu1 %v806_v2 }
  0x16   :  { %520 = vmatpush.msra.mxu1 %v818_v5 }
  0x18   :  { %521 = vmatpush.msra.mxu1 %v826_v6 }
  0x82   :  { %v71_v11 = vpop.f32.mrf.mxu0 }
  0x83   :  { %v72_v12 = vadd.f32 %v852_v9, %v71_v11 }
  0x86   :  { %v121_v13 = vpop.f32.mrf.mxu1 }
  0x87   :  { %v124_v14 = vadd.f32 %v121_v13, %v72_v12  ;;  %v25_v13 = vld [vmem:[%s993_s0 + $0x28] sm:$0xff] }
  0x88   :  { %684 = vmatmul.msk.f32.vlgmr.msra.gmra.mxu3 %vm29_vm0, %v25_v13 }
  0x89   :  { %v125_v16 = vadd.f32 %v124_v14, %v124_v14  ;;  %451 = vmatpush.msra.mxu3 %v798_v0 }
  0x8a   :  { %v74_v44 = vpop.f32.mrf.mxu0 }
  0x8b   :  { %v126_v17 = vsel %vm855_vm3, %v125_v16, %v124_v14  ;;  %v75_v45 = vadd.f32 %v852_v9, %v74_v44  ;;  %452 = vmatpush.msra.mxu3 %v806_v2  ;;  %v26_v14 = vld [vmem:[%s993_s0 + $0x30] sm:$0xff]  ;;  %v27_v16 = vld [vmem:[%s993_s0 + $0x38] sm:$0xff] }
  0x8c   :  { %v687_v18 = vmul.f32 -1.442695, %v126_v17 }
  0x8d   :  { %453 = vmatpush.msra.mxu3 %v818_v5 }
  0x8e   :  { %723 = vpow2.f32 %v687_v18 }
  0x8f   :  { %454 = vmatpush.msra.mxu3 %v826_v6 }
  0x90   :  { %685 = vmatmul.msk.f32.gmra.mxu3 %vm29_vm0, %v26_v14 }
  0x94   :  { %v724_v19 = vpop.eup %723 }
  0x95   :  { %v130_v20 = vadd.f32 1.0, %v724_v19 }
  0x97   :  { %725 = vrcp.f32 %v130_v20  ;;  %v142_v24 = vand.u32 2147483648, %v130_v20  ;;  %v140_v26 = vand.u32 2147483647, %v130_v20  ;;  %vm136_vm5 = vweird.f32 %v130_v20 }
  0x98   :  { %686 = vmatmul.msk.f32.gmra.mxu3 %vm29_vm0, %v27_v16 }
  0x99   :  { %v143_v28 = vor.u32 1.1754944e-38, %v142_v24  ;;  %vm141_vm7 = vcmp.eq.f32.partialorder %v140_v26, 8.507059e+37 }
  0x9d   :  { %v726_v21 = vpop.eup %725 }
  0x9e   :  { %v132_v22 = vmul.f32 %v726_v21, %v130_v20  ;;  %vm137_vm4 = vweird.f32 %v726_v21 }
  0x9f   :  { %vm138_vm6 = vmor %vm136_vm5, %vm137_vm4 }
  0xa0   :  { %v133_v23 = vsub.f32 1.0, %v132_v22 }
  0xa2   :  { %v134_v25 = vmul.f32 %v726_v21, %v133_v23 }
  0xa4   :  { %v135_v27 = vadd.f32 %v726_v21, %v134_v25 }
  0xa6   :  { %v139_v29 = vsel %vm138_vm6, %v726_v21, %v135_v27 }
  0xa7   :  { %v144_v30 = vsel %vm141_vm7, %v143_v28, %v139_v29 }
  0xa8   :  { %v146_v31 = vadd.f32 %v144_v30, %v144_v30 }
  0xaa   :  { %v688_v32 = vadd.f32 -1.0, %v146_v31 }
  0xac   :  { %v148_v33 = vsel %vm855_vm3, %v688_v32, %v144_v30 }
  0xad   :  { %151 = vrot.lane.b32.xlu0 %v148_v33, %s776_s25  ;;  %v149_v36 = vmul.f32 0.0, %v148_v33 }
 0x11f   :  { %v152_v34 = vpop.permute.xlu0 %151 }
 0x120   :  { %v154_v35 = vmul.f32 %v152_v34, %v148_v33 }
 0x122   :  { %156 = vrot.lane.b32.xlu0 %v154_v35, %s777_s26 }
 0x194   :  { %v157_v37 = vpop.permute.xlu0 %156 }
 0x195   :  { %v159_v38 = vadd.f32 %v157_v37, %v149_v36 }
 0x197   :  { %727 = vtanh.f32 %v159_v38 }
 0x19d   :  { %v728_v39 = vpop.eup %727 }
 0x19e   :  { %162 = vrot.lane.b32.xlu1 %v728_v39, %s776_s25 }
 0x210   :  { %v163_v40 = vpop.permute.xlu1 %162 }
 0x211   :  { %v165_v41 = vmul.f32 %v163_v40, %v148_v33 }
 0x213   :  { %167 = vrot.lane.b32.xlu1 %v165_v41, %s777_s26 }
 0x285   :  { %v168_v43 = vpop.permute.xlu1 %167 }
 0x286   :  { %689 = vmatmul.msk.f32.vlgmr.msra.gmra.mxu2 %vm100_vm8, %v168_v43 }
 0x287   :  { %585 = vmatpush.msra.mxu2 %v798_v0 }
 0x289   :  { %586 = vmatpush.msra.mxu2 %v806_v2  ;;  %v22_v2 = vld [vmem:[%s993_s0 + $0x10] sm:$0xff] }
 0x28a   :  { %681 = vmatmul.msk.f32.gmra.mxu0 %vm29_vm0, %v22_v2 }
 0x28b   :  { %587 = vmatpush.msra.mxu2 %v818_v5 }
 0x28d   :  { %588 = vmatpush.msra.mxu2 %v826_v6  ;;  %v906_v6 = vpop.f32.mrf.mxu3 }
 0x295   :  { %v908_v18 = vpop.f32.mrf.mxu3 }
 0x29d   :  { %v910_v19 = vpop.f32.mrf.mxu3 }
 0x307   :  { %v77_v20 = vpop.f32.mrf.mxu0 }
 0x308   :  { %v78_v21 = vadd.f32 %v852_v9, %v77_v20 }
 0x309   :  { %v188_v46 = vpop.f32.mrf.mxu2 }
 0x30a   :  { %v191_v47 = vadd.f32 %v188_v46, %v75_v45 }
 0x30c   :  { %v192_v48 = vadd.f32 %v191_v47, %v191_v47 }
 0x30e   :  { %v193_v49 = vsel %vm855_vm3, %v192_v48, %v191_v47  ;;  %v23_v48 = vld [vmem:[%s993_s0 + $0x18] sm:$0xff] }
 0x30f   :  { %v690_v50 = vmul.f32 -1.442695, %v193_v49  ;;  %682 = vmatmul.msk.f32.gmra.mxu0 %vm29_vm0, %v23_v48 }
 0x311   :  { %729 = vpow2.f32 %v690_v50 }
 0x317   :  { %v730_v51 = vpop.eup %729 }
 0x318   :  { %v197_v52 = vadd.f32 1.0, %v730_v51 }
 0x31a   :  { %731 = vrcp.f32 %v197_v52  ;;  %v209_v56 = vand.u32 2147483648, %v197_v52  ;;  %v207_v58 = vand.u32 2147483647, %v197_v52  ;;  %vm203_vm10 = vweird.f32 %v197_v52 }
 0x31c   :  { %v210_v60 = vor.u32 1.1754944e-38, %v209_v56  ;;  %vm208_vm12 = vcmp.eq.f32.partialorder %v207_v58, 8.507059e+37 }
 0x320   :  { %v732_v53 = vpop.eup %731 }
 0x321   :  { %v199_v54 = vmul.f32 %v732_v53, %v197_v52  ;;  %vm204_vm9 = vweird.f32 %v732_v53 }
 0x322   :  { %vm205_vm11 = vmor %vm203_vm10, %vm204_vm9 }
 0x323   :  { %v200_v55 = vsub.f32 1.0, %v199_v54 }
 0x325   :  { %v201_v57 = vmul.f32 %v732_v53, %v200_v55 }
 0x327   :  { %v202_v59 = vadd.f32 %v732_v53, %v201_v57 }
 0x329   :  { %v206_v61 = vsel %vm205_vm11, %v732_v53, %v202_v59 }
 0x32a   :  { %v211_v62 = vsel %vm208_vm12, %v210_v60, %v206_v61 }
 0x32b   :  { %v213_v63 = vadd.f32 %v211_v62, %v211_v62 }
 0x32d   :  { %v691_v1 = vadd.f32 -1.0, %v213_v63 }
 0x32f   :  { %v215_v3 = vsel %vm855_vm3, %v691_v1, %v211_v62 }
 0x330   :  { %218 = vrot.lane.b32.xlu2 %v215_v3, %s776_s25  ;;  %v216_v8 = vmul.f32 %v215_v3, %v159_v38 }
 0x38a   :  { %v219_v4 = vpop.permute.xlu2 %218 }
 0x38b   :  { %v221_v7 = vmul.f32 %v219_v4, %v215_v3 }
 0x38c   :  { %v80_v52 = vpop.f32.mrf.mxu0 }
 0x38d   :  { %223 = vrot.lane.b32.xlu2 %v221_v7, %s777_s26  ;;  %v81_v53 = vadd.f32 %v852_v9, %v80_v52 }
 0x3e7   :  { %v224_v10 = vpop.permute.xlu2 %223 }
 0x3e8   :  { %v226_v11 = vadd.f32 %v224_v10, %v216_v8 }
 0x3ea   :  { %733 = vtanh.f32 %v226_v11 }
 0x3f0   :  { %v734_v12 = vpop.eup %733 }
 0x3f1   :  { %229 = vrot.lane.b32.xlu0 %v734_v12, %s776_s25 }
 0x463   :  { %v230_v17 = vpop.permute.xlu0 %229 }
 0x464   :  { %v232_v0 = vmul.f32 %v230_v17, %v215_v3 }
 0x466   :  { %234 = vrot.lane.b32.xlu1 %v232_v0, %s777_s26 }
 0x4d8   :  { %v235_v5 = vpop.permute.xlu1 %234 }
 0x4d9   :  { %692 = vmatmul.msk.f32.vlgmr.msrb.gmra.mxu3 %vm100_vm8, %v235_v5 }
 0x55c   :  { %v255_v22 = vpop.f32.mrf.mxu3 }
 0x55d   :  { %v258_v23 = vadd.f32 %v255_v22, %v78_v21 }
 0x55f   :  { %v259_v24 = vadd.f32 %v258_v23, %v258_v23 }
 0x561   :  { %v260_v25 = vsel %vm855_vm3, %v259_v24, %v258_v23  ;;  %v24_v23 = vld [vmem:[%s993_s0 + $0x20] sm:$0xff] }
 0x562   :  { %v693_v26 = vmul.f32 -1.442695, %v260_v25  ;;  %683 = vmatmul.msk.f32.gmra.mxu0 %vm29_vm0, %v24_v23 }
 0x564   :  { %735 = vpow2.f32 %v693_v26 }
 0x56a   :  { %v736_v27 = vpop.eup %735 }
 0x56b   :  { %v264_v28 = vadd.f32 1.0, %v736_v27 }
 0x56d   :  { %737 = vrcp.f32 %v264_v28  ;;  %v276_v32 = vand.u32 2147483648, %v264_v28  ;;  %v274_v34 = vand.u32 2147483647, %v264_v28  ;;  %vm270_vm14 = vweird.f32 %v264_v28 }
 0x56f   :  { %v277_v36 = vor.u32 1.1754944e-38, %v276_v32  ;;  %vm275_vm1 = vcmp.eq.f32.partialorder %v274_v34, 8.507059e+37 }
 0x573   :  { %v738_v29 = vpop.eup %737 }
 0x574   :  { %v266_v30 = vmul.f32 %v738_v29, %v264_v28  ;;  %vm271_vm13 = vweird.f32 %v738_v29 }
 0x575   :  { %vm272_vm15 = vmor %vm270_vm14, %vm271_vm13 }
 0x576   :  { %v267_v31 = vsub.f32 1.0, %v266_v30 }
 0x578   :  { %v268_v33 = vmul.f32 %v738_v29, %v267_v31 }
 0x57a   :  { %v269_v35 = vadd.f32 %v738_v29, %v268_v33 }
 0x57c   :  { %v273_v37 = vsel %vm272_vm15, %v738_v29, %v269_v35 }
 0x57d   :  { %v278_v38 = vsel %vm275_vm1, %v277_v36, %v273_v37 }
 0x57e   :  { %v280_v39 = vadd.f32 %v278_v38, %v278_v38 }
 0x580   :  { %v694_v40 = vadd.f32 -1.0, %v280_v39 }
 0x582   :  { %v282_v41 = vsel %vm855_vm3, %v694_v40, %v278_v38 }
 0x583   :  { %285 = vrot.lane.b32.xlu2 %v282_v41, %s776_s25  ;;  %v283_v44 = vmul.f32 %v282_v41, %v226_v11 }
 0x5dd   :  { %v286_v42 = vpop.permute.xlu2 %285 }
 0x5de   :  { %v288_v43 = vmul.f32 %v286_v42, %v282_v41 }
 0x5df   :  { %v83_v25 = vpop.f32.mrf.mxu0 }
 0x5e0   :  { %290 = vrot.lane.b32.xlu0 %v288_v43, %s777_s26  ;;  %v84_v26 = vadd.f32 %v852_v9, %v83_v25 }
 0x652   :  { %v291_v45 = vpop.permute.xlu0 %290 }
 0x653   :  { %v293_v46 = vadd.f32 %v291_v45, %v283_v44 }
 0x655   :  { %739 = vtanh.f32 %v293_v46 }
 0x65b   :  { %v740_v47 = vpop.eup %739 }
 0x65c   :  { %296 = vrot.lane.b32.xlu1 %v740_v47, %s776_s25 }
 0x6ce   :  { %v297_v49 = vpop.permute.xlu1 %296 }
 0x6cf   :  { %v299_v50 = vmul.f32 %v297_v49, %v282_v41 }
 0x6d1   :  { %301 = vrot.lane.b32.xlu2 %v299_v50, %s777_s26 }
 0x72b   :  { %v302_v51 = vpop.permute.xlu2 %301 }
 0x72c   :  { %695 = vmatmul.msk.f32.vlgmr.msrb.gmra.mxu1 %vm100_vm8, %v302_v51 }
 0x7a9   :  { %v322_v54 = vpop.f32.mrf.mxu1 }
 0x7aa   :  { %v325_v55 = vadd.f32 %v322_v54, %v81_v53 }
 0x7ac   :  { %v326_v56 = vadd.f32 %v325_v55, %v325_v55 }
 0x7ae   :  { %v327_v57 = vsel %vm855_vm3, %v326_v56, %v325_v55  ;;  %v87_v56 = vadd.f32 %v852_v9, %v906_v6 }
 0x7af   :  { %v696_v58 = vmul.f32 -1.442695, %v327_v57 }
 0x7b1   :  { %741 = vpow2.f32 %v696_v58 }
 0x7b7   :  { %v742_v59 = vpop.eup %741 }
 0x7b8   :  { %v331_v60 = vadd.f32 1.0, %v742_v59 }
 0x7ba   :  { %743 = vrcp.f32 %v331_v60  ;;  %v343_v1 = vand.u32 2147483648, %v331_v60  ;;  %v341_v4 = vand.u32 2147483647, %v331_v60  ;;  %vm337_vm4 = vweird.f32 %v331_v60 }
 0x7bc   :  { %v344_v8 = vor.u32 1.1754944e-38, %v343_v1  ;;  %vm342_vm6 = vcmp.eq.f32.partialorder %v341_v4, 8.507059e+37 }
 0x7c0   :  { %v744_v61 = vpop.eup %743 }
 0x7c1   :  { %v333_v62 = vmul.f32 %v744_v61, %v331_v60  ;;  %vm338_vm2 = vweird.f32 %v744_v61 }
 0x7c2   :  { %vm339_vm5 = vmor %vm337_vm4, %vm338_vm2 }
 0x7c3   :  { %v334_v63 = vsub.f32 1.0, %v333_v62 }
 0x7c5   :  { %v335_v3 = vmul.f32 %v744_v61, %v334_v63 }
 0x7c7   :  { %v336_v7 = vadd.f32 %v744_v61, %v335_v3 }
 0x7c9   :  { %v340_v10 = vsel %vm339_vm5, %v744_v61, %v336_v7 }
 0x7ca   :  { %v345_v11 = vsel %vm342_vm6, %v344_v8, %v340_v10 }
 0x7cb   :  { %v347_v12 = vadd.f32 %v345_v11, %v345_v11 }
 0x7cd   :  { %v697_v13 = vadd.f32 -1.0, %v347_v12 }
 0x7cf   :  { %v349_v14 = vsel %vm855_vm3, %v697_v13, %v345_v11 }
 0x7d0   :  { %352 = vrot.lane.b32.xlu0 %v349_v14, %s776_s25  ;;  %v350_v0 = vmul.f32 %v349_v14, %v293_v46 }
 0x842   :  { %v353_v16 = vpop.permute.xlu0 %352 }
 0x843   :  { %v355_v17 = vmul.f32 %v353_v16, %v349_v14 }
 0x845   :  { %357 = vrot.lane.b32.xlu1 %v355_v17, %s777_s26 }
 0x8b7   :  { %v358_v2 = vpop.permute.xlu1 %357 }
 0x8b8   :  { %v360_v5 = vadd.f32 %v358_v2, %v350_v0 }
 0x8ba   :  { %745 = vtanh.f32 %v360_v5 }
 0x8c0   :  { %v746_v20 = vpop.eup %745 }
 0x8c1   :  { %363 = vrot.lane.b32.xlu2 %v746_v20, %s776_s25 }
 0x91b   :  { %v364_v21 = vpop.permute.xlu2 %363 }
 0x91c   :  { %v366_v22 = vmul.f32 %v364_v21, %v349_v14 }
 0x91e   :  { %368 = vrot.lane.b32.xlu0 %v366_v22, %s777_s26 }
 0x990   :  { %v369_v24 = vpop.permute.xlu0 %368 }
 0x991   :  { %698 = vmatmul.msk.f32.vlgmr.msrb.gmra.mxu2 %vm100_vm8, %v369_v24 }
 0xa14   :  { %v389_v27 = vpop.f32.mrf.mxu2 }
 0xa15   :  { %v392_v28 = vadd.f32 %v389_v27, %v84_v26  ;;  %v90_v26 = vadd.f32 %v852_v9, %v908_v18 }
 0xa17   :  { %v393_v29 = vadd.f32 %v392_v28, %v392_v28 }
 0xa19   :  { %v394_v30 = vsel %vm855_vm3, %v393_v29, %v392_v28 }
 0xa1a   :  { %v699_v31 = vmul.f32 -1.442695, %v394_v30 }
 0xa1c   :  { %747 = vpow2.f32 %v699_v31 }
 0xa22   :  { %v748_v32 = vpop.eup %747 }
 0xa23   :  { %v398_v33 = vadd.f32 1.0, %v748_v32 }
 0xa25   :  { %749 = vrcp.f32 %v398_v33  ;;  %v410_v37 = vand.u32 2147483648, %v398_v33  ;;  %v408_v39 = vand.u32 2147483647, %v398_v33  ;;  %vm404_vm7 = vweird.f32 %v398_v33 }
 0xa27   :  { %v411_v41 = vor.u32 1.1754944e-38, %v410_v37  ;;  %vm409_vm10 = vcmp.eq.f32.partialorder %v408_v39, 8.507059e+37 }
 0xa2b   :  { %v750_v34 = vpop.eup %749 }
 0xa2c   :  { %v400_v35 = vmul.f32 %v750_v34, %v398_v33  ;;  %vm405_vm0 = vweird.f32 %v750_v34 }
 0xa2d   :  { %vm406_vm9 = vmor %vm404_vm7, %vm405_vm0 }
 0xa2e   :  { %v401_v36 = vsub.f32 1.0, %v400_v35 }
 0xa30   :  { %v402_v38 = vmul.f32 %v750_v34, %v401_v36 }
 0xa32   :  { %v403_v40 = vadd.f32 %v750_v34, %v402_v38 }
 0xa34   :  { %v407_v42 = vsel %vm406_vm9, %v750_v34, %v403_v40 }
 0xa35   :  { %v412_v43 = vsel %vm409_vm10, %v411_v41, %v407_v42 }
 0xa36   :  { %v414_v44 = vadd.f32 %v412_v43, %v412_v43 }
 0xa38   :  { %v700_v45 = vadd.f32 -1.0, %v414_v44 }
 0xa3a   :  { %v416_v46 = vsel %vm855_vm3, %v700_v45, %v412_v43 }
 0xa3b   :  { %419 = vrot.lane.b32.xlu1 %v416_v46, %s776_s25  ;;  %v417_v49 = vmul.f32 %v416_v46, %v360_v5 }
 0xaad   :  { %v420_v47 = vpop.permute.xlu1 %419 }
 0xaae   :  { %v422_v48 = vmul.f32 %v420_v47, %v416_v46 }
 0xab0   :  { %424 = vrot.lane.b32.xlu2 %v422_v48, %s777_s26 }
 0xb0a   :  { %v425_v50 = vpop.permute.xlu2 %424 }
 0xb0b   :  { %v427_v51 = vadd.f32 %v425_v50, %v417_v49 }
 0xb0d   :  { %751 = vtanh.f32 %v427_v51 }
 0xb13   :  { %v752_v52 = vpop.eup %751 }
 0xb14   :  { %430 = vrot.lane.b32.xlu0 %v752_v52, %s776_s25 }
 0xb86   :  { %v431_v53 = vpop.permute.xlu0 %430 }
 0xb87   :  { %v433_v54 = vmul.f32 %v431_v53, %v416_v46 }
 0xb89   :  { %435 = vrot.lane.b32.xlu1 %v433_v54, %s777_s26 }
 0xbfb   :  { %v436_v55 = vpop.permute.xlu1 %435 }
 0xbfc   :  { %701 = vmatmul.msk.f32.vlgmr.msra.gmra.mxu3 %vm100_vm8, %v436_v55  ;;  %v93_v55 = vadd.f32 %v852_v9, %v910_v19 }
 0xc7f   :  { %v456_v57 = vpop.f32.mrf.mxu3 }
 0xc80   :  { %v459_v58 = vadd.f32 %v456_v57, %v87_v56 }
 0xc82   :  { %v460_v59 = vadd.f32 %v459_v58, %v459_v58 }
 0xc84   :  { %v461_v60 = vsel %vm855_vm3, %v460_v59, %v459_v58 }
 0xc85   :  { %v702_v61 = vmul.f32 -1.442695, %v461_v60 }
 0xc87   :  { %753 = vpow2.f32 %v702_v61 }
 0xc8d   :  { %v754_v62 = vpop.eup %753 }
 0xc8e   :  { %v465_v63 = vadd.f32 1.0, %v754_v62 }
 0xc90   :  { %755 = vrcp.f32 %v465_v63  ;;  %v477_v7 = vand.u32 2147483648, %v465_v63  ;;  %v475_v10 = vand.u32 2147483647, %v465_v63  ;;  %vm471_vm12 = vweird.f32 %v465_v63 }
 0xc92   :  { %v478_v6 = vor.u32 1.1754944e-38, %v477_v7  ;;  %vm476_vm14 = vcmp.eq.f32.partialorder %v475_v10, 8.507059e+37 }
 0xc96   :  { %v756_v1 = vpop.eup %755 }
 0xc97   :  { %v467_v3 = vmul.f32 %v756_v1, %v465_v63  ;;  %vm472_vm11 = vweird.f32 %v756_v1 }
 0xc98   :  { %vm473_vm13 = vmor %vm471_vm12, %vm472_vm11 }
 0xc99   :  { %v468_v4 = vsub.f32 1.0, %v467_v3 }
 0xc9b   :  { %v469_v8 = vmul.f32 %v756_v1, %v468_v4 }
 0xc9d   :  { %v470_v11 = vadd.f32 %v756_v1, %v469_v8 }
 0xc9f   :  { %v474_v12 = vsel %vm473_vm13, %v756_v1, %v470_v11 }
 0xca0   :  { %v479_v13 = vsel %vm476_vm14, %v478_v6, %v474_v12 }
 0xca1   :  { %v481_v14 = vadd.f32 %v479_v13, %v479_v13 }
 0xca3   :  { %v703_v16 = vadd.f32 -1.0, %v481_v14 }
 0xca5   :  { %v483_v17 = vsel %vm855_vm3, %v703_v16, %v479_v13 }
 0xca6   :  { %486 = vrot.lane.b32.xlu2 %v483_v17, %s776_s25  ;;  %v484_v5 = vmul.f32 %v483_v17, %v427_v51 }
 0xd00   :  { %v487_v0 = vpop.permute.xlu2 %486 }
 0xd01   :  { %v489_v2 = vmul.f32 %v487_v0, %v483_v17 }
 0xd03   :  { %491 = vrot.lane.b32.xlu0 %v489_v2, %s777_s26 }
 0xd75   :  { %v492_v20 = vpop.permute.xlu0 %491 }
 0xd76   :  { %v494_v21 = vadd.f32 %v492_v20, %v484_v5 }
 0xd78   :  { %757 = vtanh.f32 %v494_v21 }
 0xd7e   :  { %v758_v22 = vpop.eup %757 }
 0xd7f   :  { %497 = vrot.lane.b32.xlu1 %v758_v22, %s776_s25 }
 0xdf1   :  { %v498_v23 = vpop.permute.xlu1 %497 }
 0xdf2   :  { %v500_v24 = vmul.f32 %v498_v23, %v483_v17  ;;  %v721_v17 = vld [vmem:[%s992_s1 + $0x31] ss:$0 sm:$0xff] }
 0xdf4   :  { %502 = vrot.lane.b32.xlu2 %v500_v24, %s777_s26 }
 0xe4e   :  { %v503_v25 = vpop.permute.xlu2 %502 }
 0xe4f   :  { %704 = vmatmul.msk.f32.vlgmr.msra.gmra.mxu1 %vm100_vm8, %v503_v25 }
 0xecc   :  { %v523_v27 = vpop.f32.mrf.mxu1 }
 0xecd   :  { %v526_v28 = vadd.f32 %v523_v27, %v90_v26  ;;  %v779_v26 = vmov 0   ;;  %v722_v27 = vld [vmem:[%s992_s1 + $0x32] ss:$0 sm:$0xff] }
 0xece   :  { %718 = vset.pattern.permute.xlu1 %v779_v26  ;;  %719 = vset.pattern.permute.xlu0 %v779_v26 }
 0xecf   :  { %v527_v29 = vadd.f32 %v526_v28, %v526_v28 }
 0xed1   :  { %v528_v30 = vsel %vm855_vm3, %v527_v29, %v526_v28 }
 0xed2   :  { %v705_v31 = vmul.f32 -1.442695, %v528_v30 }
 0xed4   :  { %759 = vpow2.f32 %v705_v31 }
 0xeda   :  { %v760_v32 = vpop.eup %759 }
 0xedb   :  { %v532_v33 = vadd.f32 1.0, %v760_v32 }
 0xedd   :  { %761 = vrcp.f32 %v532_v33  ;;  %v544_v37 = vand.u32 2147483648, %v532_v33  ;;  %v542_v39 = vand.u32 2147483647, %v532_v33  ;;  %vm538_vm1 = vweird.f32 %v532_v33 }
 0xedf   :  { %v545_v18 = vor.u32 1.1754944e-38, %v544_v37  ;;  %vm543_vm4 = vcmp.eq.f32.partialorder %v542_v39, 8.507059e+37 }
 0xee3   :  { %v762_v34 = vpop.eup %761 }
 0xee4   :  { %v534_v35 = vmul.f32 %v762_v34, %v532_v33  ;;  %vm539_vm15 = vweird.f32 %v762_v34 }
 0xee5   :  { %vm540_vm2 = vmor %vm538_vm1, %vm539_vm15 }
 0xee6   :  { %v535_v36 = vsub.f32 1.0, %v534_v35 }
 0xee8   :  { %v536_v38 = vmul.f32 %v762_v34, %v535_v36 }
 0xeea   :  { %v537_v40 = vadd.f32 %v762_v34, %v536_v38 }
 0xeec   :  { %v541_v41 = vsel %vm540_vm2, %v762_v34, %v537_v40 }
 0xeed   :  { %v546_v42 = vsel %vm543_vm4, %v545_v18, %v541_v41 }
 0xeee   :  { %v548_v43 = vadd.f32 %v546_v42, %v546_v42 }
 0xef0   :  { %v706_v44 = vadd.f32 -1.0, %v548_v43 }
 0xef2   :  { %v550_v45 = vsel %vm855_vm3, %v706_v44, %v546_v42 }
 0xef3   :  { %553 = vrot.lane.b32.xlu0 %v550_v45, %s776_s25  ;;  %v551_v48 = vmul.f32 %v550_v45, %v494_v21 }
 0xf65   :  { %v554_v46 = vpop.permute.xlu0 %553 }
 0xf66   :  { %v556_v47 = vmul.f32 %v554_v46, %v550_v45 }
 0xf68   :  { %558 = vrot.lane.b32.xlu1 %v556_v47, %s777_s26 }
 0xfda   :  { %v559_v49 = vpop.permute.xlu1 %558 }
 0xfdb   :  { %v561_v50 = vadd.f32 %v559_v49, %v551_v48 }
 0xfdd   :  { %763 = vtanh.f32 %v561_v50 }
 0xfe3   :  { %v764_v51 = vpop.eup %763 }
 0xfe4   :  { %564 = vrot.lane.b32.xlu2 %v764_v51, %s776_s25 }
0x103e   :  { %v565_v52 = vpop.permute.xlu2 %564 }
0x103f   :  { %v567_v53 = vmul.f32 %v565_v52, %v550_v45 }
0x1041   :  { %569 = vrot.lane.b32.xlu0 %v567_v53, %s777_s26 }
0x10b3   :  { %v570_v54 = vpop.permute.xlu0 %569 }
0x10b4   :  { %707 = vmatmul.msk.f32.vlgmr.msra.gmra.mxu2 %vm100_vm8, %v570_v54 }
0x1137   :  { %v590_v56 = vpop.f32.mrf.mxu2 }
0x1138   :  { %v593_v57 = vadd.f32 %v590_v56, %v93_v55 }
0x113a   :  { %v594_v58 = vadd.f32 %v593_v57, %v593_v57 }
0x113c   :  { %v595_v59 = vsel %vm855_vm3, %v594_v58, %v593_v57 }
0x113d   :  { %v708_v60 = vmul.f32 -1.442695, %v595_v59 }
0x113f   :  { %765 = vpow2.f32 %v708_v60 }
0x1145   :  { %v766_v61 = vpop.eup %765 }
0x1146   :  { %v599_v62 = vadd.f32 1.0, %v766_v61 }
0x1148   :  { %767 = vrcp.f32 %v599_v62  ;;  %v611_v4 = vand.u32 2147483648, %v599_v62  ;;  %v609_v8 = vand.u32 2147483647, %v599_v62  ;;  %vm605_vm6 = vweird.f32 %v599_v62 }
0x114a   :  { %v612_v9 = vor.u32 1.1754944e-38, %v611_v4  ;;  %vm610_vm7 = vcmp.eq.f32.partialorder %v609_v8, 8.507059e+37 }
0x114e   :  { %v768_v63 = vpop.eup %767 }
0x114f   :  { %v601_v1 = vmul.f32 %v768_v63, %v599_v62  ;;  %vm606_vm5 = vweird.f32 %v768_v63 }
0x1150   :  { %vm607_vm0 = vmor %vm605_vm6, %vm606_vm5 }
0x1151   :  { %v602_v3 = vsub.f32 1.0, %v601_v1 }
0x1153   :  { %v603_v7 = vmul.f32 %v768_v63, %v602_v3 }
0x1155   :  { %v604_v10 = vadd.f32 %v768_v63, %v603_v7 }
0x1157   :  { %v608_v19 = vsel %vm607_vm0, %v768_v63, %v604_v10 }
0x1158   :  { %v613_v11 = vsel %vm610_vm7, %v612_v9, %v608_v19 }
0x1159   :  { %v615_v6 = vadd.f32 %v613_v11, %v613_v11 }
0x115b   :  { %v709_v12 = vadd.f32 -1.0, %v615_v6 }
0x115d   :  { %v617_v13 = vsel %vm855_vm3, %v709_v12, %v613_v11 }
0x115e   :  { %620 = vrot.lane.b32.xlu1 %v617_v13, %s776_s25  ;;  %v618_v0 = vmul.f32 %v617_v13, %v561_v50 }
0x1166   :  { %637 = vrot.lane.b32.xlu1 %v721_v17, %s778_s14 }
0x11d0   :  { %v621_v14 = vpop.permute.xlu1 %620 }
0x11d1   :  { %v623_v16 = vmul.f32 %v621_v14, %v617_v13 }
0x11d3   :  { %625 = vrot.lane.b32.xlu2 %v623_v16, %s777_s26 }
0x11d8   :  { %v638_v21 = vpop.permute.xlu1 %637 }
0x122d   :  { %v626_v2 = vpop.permute.xlu2 %625 }
0x122e   :  { %v628_v5 = vadd.f32 %v626_v2, %v618_v0 }
0x1230   :  { %769 = vtanh.f32 %v628_v5 }
0x1236   :  { %v770_v20 = vpop.eup %769 }
0x1237   :  { %631 = vrot.lane.b32.xlu0 %v770_v20, %s776_s25 }
0x12a9   :  { %v632_v15 = vpop.permute.xlu0 %631 }
0x12aa   :  { %v634_v22 = vmul.f32 %v632_v15, %v617_v13 }
0x12ac   :  { %v640_v23 = vmul.f32 %v638_v21, %v634_v22 }
0x12ae   :  { %642 = vrot.lane.b32.xlu2 %v640_v23, %s777_s26 }
0x1308   :  { %v643_v24 = vpop.permute.xlu2 %642 }
0x1309   :  { %v645_v25 = vsel %vm100_vm8, %v643_v24, 0.0 }
0x130a   :  { %646 = vadd.xlane.f32.xlu0 %v645_v25 }
0x137d   :  { %v647_v28 = vpop.xlane.xlu0 %646 }
0x137e   :  { %v649_v29 = vadd.f32 %v722_v27, %v647_v28 }
0x1380   :  { %v710_v30 = vmul.f32 -1.442695, %v649_v29 }
0x1382   :  { %771 = vpow2.f32 %v710_v30 }
0x1388   :  { %v772_v31 = vpop.eup %771 }
0x1389   :  { %v653_v32 = vadd.f32 1.0, %v772_v31 }
0x138b   :  { %773 = vrcp.f32 %v653_v32  ;;  %v665_v36 = vand.u32 2147483648, %v653_v32  ;;  %v663_v38 = vand.u32 2147483647, %v653_v32  ;;  %vm659_vm8 = vweird.f32 %v653_v32 }
0x138d   :  { %v666_v40 = vor.u32 1.1754944e-38, %v665_v36  ;;  %vm664_vm10 = vcmp.eq.f32.partialorder %v663_v38, 8.507059e+37 }
0x1391   :  { %v774_v33 = vpop.eup %773 }
0x1392   :  { %v655_v34 = vmul.f32 %v774_v33, %v653_v32  ;;  %vm660_vm3 = vweird.f32 %v774_v33 }
0x1393   :  { %vm661_vm9 = vmor %vm659_vm8, %vm660_vm3 }
0x1394   :  { %v656_v35 = vsub.f32 1.0, %v655_v34 }
0x1396   :  { %v657_v37 = vmul.f32 %v774_v33, %v656_v35 }
0x1398   :  { %v658_v39 = vadd.f32 %v774_v33, %v657_v37 }
0x139a   :  { %v662_v18 = vsel %vm661_vm9, %v774_v33, %v658_v39 }
0x139b   :  { %v667_v41 = vsel %vm664_vm10, %v666_v40, %v662_v18 }
0x139c   :  { %671 = vperm.xlu1 %718, %v667_v41  }
0x140e   :  { %v672_v42 = vpop.permute.xlu1 %671 }
0x140f   :  { %674 = vst [vmem:[%s994_s2] sm:$0xff] %v672_v42 }

</bundles_post_ra>
